<compile_context>
chip_gen: v5e
topology: v5e:2x2
jax: 0.10.0
libtpu: 0.0.40
codegen_flags: <defaults>
</compile_context>

<pallas_src>
import functools
import math

import jax
import jax.numpy as jnp
import numpy as np
from jax import lax
from jax.experimental import pallas as pl
from jax.experimental.pallas import tpu as pltpu

LANE = 128
SUBLANE_BF16 = 16


def _round_up(x, m):
    return (x + m - 1) // m * m


def _flash_qkv_kernel(x1_ref, x2_ref, wq_ref, bq_ref, wkv_ref, bkv_ref,
                      out_ref, q_scr, m_scr, l_scr, acc_scr, *,
                      s2_valid, s2_padded):
    kv = pl.program_id(1)
    n_kv = pl.num_programs(1)

    TB, S1p, Fp = x1_ref.shape
    _, tS2, _ = x2_ref.shape
    Dp = wq_ref.shape[1]

    # --- per-batch-block init + Q projection (once per batch block) ---------
    @pl.when(kv == 0)
    def _():
        x1 = x1_ref[...].reshape(TB * S1p, Fp)          # bf16, layout no-op
        q = jnp.dot(x1, wq_ref[...], preferred_element_type=jnp.float32)
        q = q + bq_ref[...]                              # scale folded into W/b
        q_scr[...] = q.astype(jnp.bfloat16).reshape(TB, S1p, Dp)
        m_scr[...] = jnp.full(m_scr.shape, -jnp.inf, m_scr.dtype)
        l_scr[...] = jnp.zeros(l_scr.shape, l_scr.dtype)
        acc_scr[...] = jnp.zeros(acc_scr.shape, acc_scr.dtype)

    # --- K/V projection for this S2 tile (fused weight, per-half bias) ------
    x2 = x2_ref[...].reshape(TB * tS2, Fp)
    kvp = jnp.dot(x2, wkv_ref[...], preferred_element_type=jnp.float32)
    k = (kvp[:, :Dp] + bkv_ref[:, :Dp]).astype(jnp.bfloat16).reshape(TB, tS2, Dp)
    v = (kvp[:, Dp:] + bkv_ref[:, Dp:]).astype(jnp.bfloat16).reshape(TB, tS2, Dp)

    # --- scores for this tile: contract last axes (no transpose) ------------
    # NOTE: per-batch M for these two dot_generals is S1p; small S1 underfills
    # the 256-wide MXU on v6e/v7x regardless of TB.
    s = lax.dot_general(q_scr[...], k,
                        dimension_numbers=(((2,), (2,)), ((0,), (0,))),
                        preferred_element_type=jnp.float32)   # (TB, S1p, tS2)

    if s2_padded != s2_valid:                      # static; only when S2 padded
        col = kv * tS2 + lax.broadcasted_iota(jnp.int32, (TB, S1p, tS2), 2)
        s = jnp.where(col < s2_valid, s, jnp.float32(-1e30))

    # --- online softmax update ----------------------------------------------
    # TODO(synk): on v6e/v7x the exp could run in bf16 (sum in f32) for ~2x EUP.
    m_prev = m_scr[...]
    m_new = jnp.maximum(m_prev, jnp.max(s, axis=-1, keepdims=True))
    alpha = jnp.exp(m_prev - m_new)
    p = jnp.exp(s - m_new)
    l_scr[...] = alpha * l_scr[...] + jnp.sum(p, axis=-1, keepdims=True)
    acc_scr[...] = alpha * acc_scr[...] + lax.dot_general(
        p.astype(jnp.bfloat16), v,
        dimension_numbers=(((2,), (1,)), ((0,), (0,))),
        preferred_element_type=jnp.float32)
    m_scr[...] = m_new

    # --- finalize -------------------------------------------------------------
    @pl.when(kv == n_kv - 1)
    def _():
        out_ref[...] = (acc_scr[...] *
                        pl.reciprocal(l_scr[...], approx=True)
                        ).astype(out_ref.dtype)


def _vmem_budget():
    cap = 0
    try:
        info = pltpu.get_tpu_info()
        cap = int(getattr(info, "vmem_capacity_bytes", 0) or 0)
    except Exception:
        cap = 0
    if cap <= 0:
        cap = 64 * 1024 * 1024          # conservative (v7x per-core VMEM)
    limit = max(32 * 1024 * 1024, min(cap - 8 * 1024 * 1024, 100 * 1024 * 1024))
    return limit, int(limit * 0.75)


def _pick_batch_block(B, S1p, tS2, Fp, Dp, budget):
    # Keep >= 2 grid steps on the "parallel" batch axis so both v7x cores work.
    cap = B // 2 if B >= 2 else 1
    cap = max(1, min(cap, 16))

    def usage(tb):
        x1 = 2 * tb * S1p * Fp * 2                 # double-buffered bf16 tile
        x2 = 2 * tb * tS2 * Fp * 2
        out_t = 2 * tb * S1p * Dp * 2              # bf16 output tile
        wts = 2 * (Fp * 3 * Dp * 2 + 3 * Dp * 4)   # weights + biases (2 bufs)
        scr = tb * S1p * Dp * (2 + 4) + 2 * tb * S1p * 4   # q/acc/m/l scratch
        tmp = (2 * tb * S1p * tS2 * 4              # scores + probs (f32)
               + tb * tS2 * 2 * Dp * 4             # kv projection (f32)
               + tb * S1p * Dp * 4)                # q projection (f32)
        return x1 + x2 + out_t + wts + scr + tmp

    tb = 1
    for cand in range(2, cap + 1):
        if usage(cand) <= budget:
            tb = cand
    return tb
    # TODO(synk): if usage(1) still exceeds the budget (very long S1), add an
    # S1 grid axis as well.


def qkv_attention(x1, x2, wq, bq, wk, bk, wv, bv, *, kv_block=512,
                  out_dtype=jnp.bfloat16):
    B, S1, F = x1.shape
    _, S2, _ = x2.shape
    D = wq.shape[1]

    Fp = _round_up(F, LANE)
    Dp = _round_up(D, LANE)
    S1p = _round_up(S1, SUBLANE_BF16)
    kv_block = _round_up(kv_block, SUBLANE_BF16)
    s2_16 = _round_up(S2, SUBLANE_BF16)
    if s2_16 <= kv_block:
        tS2, S2p = s2_16, s2_16
    else:
        tS2, S2p = kv_block, _round_up(S2, kv_block)

    vmem_limit, budget = _vmem_budget()
    TB = _pick_batch_block(B, S1p, tS2, Fp, Dp, budget)
    Bp = _round_up(B, TB)

    # Padding fused with the bf16 cast; skipped entirely when it is a no-op.
    def pad3(x, bp, sp, fp):
        xb = x.astype(jnp.bfloat16)
        b, s, f = x.shape
        if (b, s, f) == (bp, sp, fp):
            return xb
        return jnp.pad(xb, ((0, bp - b), (0, sp - s), (0, fp - f)))

    x1p = pad3(x1, Bp, S1p, Fp)
    x2p = pad3(x2, Bp, S2p, Fp)

    scale = 1.0 / math.sqrt(float(D))       # matches `intermediate_dim ** 0.5`

    def pad_w(w, s=1.0):
        w = w.astype(jnp.float32) * s
        f, d = w.shape
        if (f, d) != (Fp, Dp):
            w = jnp.pad(w, ((0, Fp - f), (0, Dp - d)))
        return w.astype(jnp.bfloat16)

    def pad_b(b, s=1.0):
        b = b.reshape(1, -1).astype(jnp.float32) * s
        d = b.shape[1]
        if d != Dp:
            b = jnp.pad(b, ((0, 0), (0, Dp - d)))
        return b

    wq_p = pad_w(wq, scale)                          # scale folded into Q path
    bq_p = pad_b(bq, scale)
    wkv_p = jnp.concatenate([pad_w(wk), pad_w(wv)], axis=1)    # (Fp, 2*Dp)
    bkv_p = jnp.concatenate([pad_b(bk), pad_b(bv)], axis=1)    # (1, 2*Dp)

    kernel = functools.partial(_flash_qkv_kernel, s2_valid=S2, s2_padded=S2p)

    flops = (2 * Bp * S1p * Fp * Dp                  # Q projection
             + 2 * Bp * S2p * Fp * (2 * Dp)          # fused K/V projection
             + 4 * Bp * S1p * S2p * Dp)              # scores + P@V
    bytes_accessed = (x1p.size * 2 + x2p.size * 2
                      + wq_p.size * 2 + wkv_p.size * 2
                      + (bq_p.size + bkv_p.size) * 4
                      + Bp * S1p * Dp * jnp.dtype(out_dtype).itemsize)

    out = pl.pallas_call(
        kernel,
        out_shape=jax.ShapeDtypeStruct((Bp, S1p, Dp), out_dtype),
        grid_spec=pltpu.PrefetchScalarGridSpec(
            num_scalar_prefetch=0,
            grid=(Bp // TB, S2p // tS2),
            in_specs=[
                pl.BlockSpec((TB, S1p, Fp), lambda b, k: (b, 0, 0)),   # x1
                pl.BlockSpec((TB, tS2, Fp), lambda b, k: (b, k, 0)),   # x2 tile
                pl.BlockSpec((Fp, Dp), lambda b, k: (0, 0)),           # Wq*scale
                pl.BlockSpec((1, Dp), lambda b, k: (0, 0)),            # bq*scale
                pl.BlockSpec((Fp, 2 * Dp), lambda b, k: (0, 0)),       # W_kv
                pl.BlockSpec((1, 2 * Dp), lambda b, k: (0, 0)),        # b_kv
                # TODO(synk): single-buffer the constant weight blocks
                # (pipeline_mode=pl.Buffered(1)) once verified on target jax.
            ],
            out_specs=pl.BlockSpec((TB, S1p, Dp), lambda b, k: (b, 0, 0)),
            scratch_shapes=[
                pltpu.VMEM((TB, S1p, Dp), jnp.bfloat16),   # Q (scaled+biased)
                pltpu.VMEM((TB, S1p, 1), jnp.float32),     # running max m
                pltpu.VMEM((TB, S1p, 1), jnp.float32),     # running sum l
                pltpu.VMEM((TB, S1p, Dp), jnp.float32),    # output accumulator
            ],
        ),
        compiler_params=pltpu.CompilerParams(
            dimension_semantics=("parallel", "arbitrary"),
            vmem_limit_bytes=vmem_limit),
        cost_estimate=pl.CostEstimate(
            flops=flops,
            transcendentals=Bp * S1p * S2p,
            bytes_accessed=bytes_accessed),
    )(x1p, x2p, wq_p, bq_p, wkv_p, bkv_p)

    if (Bp, S1p, Dp) != (B, S1, D):
        out = out[:B, :S1, :D]
    return out


def _init_linear(key, fan_in, fan_out):
    """Deterministic init mimicking nn.Linear defaults (uniform ±1/sqrt(fan_in)).
    Weight stored as (fan_in, fan_out) == torch weight.T."""
    kw, kb = jax.random.split(key)
    bound = 1.0 / math.sqrt(fan_in)
    w = jax.random.uniform(kw, (fan_in, fan_out), jnp.float32, -bound, bound)
    b = jax.random.uniform(kb, (1, fan_out), jnp.float32, -bound, bound)
    return w, b


def _reference(x1, x2, wq, bq, wk, bk, wv, bv):
    q = x1 @ wq + bq
    k = x2 @ wk + bk
    v = x2 @ wv + bv
    d = q.shape[-1]
    scores = jnp.einsum("bqd,bkd->bqk", q, k) / jnp.sqrt(jnp.float32(d))
    probs = jax.nn.softmax(scores, axis=-1)
    return jnp.einsum("bqk,bkd->bqd", probs, v)


def _run_case(key, B, S1, S2, F, D, kv_block):
    kx1, kx2, kq, kk, kv = jax.random.split(key, 5)
    x1 = jax.random.normal(kx1, (B, S1, F), jnp.float32)
    x2 = jax.random.normal(kx2, (B, S2, F), jnp.float32)
    wq, bq = _init_linear(kq, F, D)
    wk, bk = _init_linear(kk, F, D)
    wv, bv = _init_linear(kv, F, D)

    out = qkv_attention(x1, x2, wq, bq, wk, bk, wv, bv, kv_block=kv_block)
    out = jax.block_until_ready(out)

    ref = _reference(x1, x2, wq, bq, wk, bk, wv, bv)
    # bf16 MXU inputs / bf16 output -> relaxed tolerance vs the f32 reference.
    np.testing.assert_allclose(np.asarray(out, dtype=np.float32),
                               np.asarray(ref), rtol=5e-2, atol=5e-2)


if __name__ == "__main__":
    root = jax.random.PRNGKey(0)
    k1, k2 = jax.random.split(root)

    # Module-default shapes: feature_dim=32, intermediate_dim=64.
    _run_case(k1, B=2, S1=8, S2=8, F=32, D=64, kv_block=512)

    # Exercise the S2-tiled online-softmax path: multiple kv tiles with padded
    # key masking, batch blocking (TB=2), and S1 sublane padding.
    _run_case(k2, B=4, S1=24, S2=40, F=32, D=64, kv_block=16)

    print("KERNEL_OK")
</pallas_src>

<mosaic_0001>
module attributes {stable_mosaic.version = 11 : i64} {
  func.func @_flash_qkv_kernel(%arg0: i32, %arg1: i32, %arg2: memref<1x16x128xbf16, #tpu.memory_space<vmem>>, %arg3: memref<1x16x128xbf16, #tpu.memory_space<vmem>>, %arg4: memref<128x128xbf16, #tpu.memory_space<vmem>>, %arg5: memref<1x128xf32, #tpu.memory_space<vmem>>, %arg6: memref<128x256xbf16, #tpu.memory_space<vmem>>, %arg7: memref<1x256xf32, #tpu.memory_space<vmem>>, %arg8: memref<1x16x128xbf16, #tpu.memory_space<vmem>>, %arg9: memref<1x16x128xbf16, #tpu.memory_space<vmem>>, %arg10: memref<1x16x1xf32, #tpu.memory_space<vmem>>, %arg11: memref<1x16x1xf32, #tpu.memory_space<vmem>>, %arg12: memref<1x16x128xf32, #tpu.memory_space<vmem>>) attributes {dimension_semantics = [#tpu.dimension_semantics<parallel>, #tpu.dimension_semantics<arbitrary>], iteration_bounds = array<i64: 2, 1>, scalar_prefetch = 0 : i64, scratch_operands = 4 : i64, tpu.core_type = #tpu.core_type<tc>, window_params = [{transform_indices = @transform_0, window_bounds = array<i64: 1, 16, 128>}, {transform_indices = @transform_1, window_bounds = array<i64: 1, 16, 128>}, {pipeline_mode = #tpu.pipeline_mode<synchronous>, transform_indices = @transform_2, window_bounds = array<i64: 128, 128>}, {pipeline_mode = #tpu.pipeline_mode<synchronous>, transform_indices = @transform_3, window_bounds = array<i64: 1, 128>}, {pipeline_mode = #tpu.pipeline_mode<synchronous>, transform_indices = @transform_4, window_bounds = array<i64: 128, 256>}, {pipeline_mode = #tpu.pipeline_mode<synchronous>, transform_indices = @transform_5, window_bounds = array<i64: 1, 256>}, {transform_indices = @transform_6, window_bounds = array<i64: 1, 16, 128>}]} {
    %c0_i32 = arith.constant 0 : i32
    %0 = arith.cmpi eq, %arg1, %c0_i32 : i32
    %1 = arith.extui %0 : i1 to i32
    %c0_i32_0 = arith.constant 0 : i32
    %2 = arith.cmpi ne, %1, %c0_i32_0 : i32
    scf.if %2 {
      %c0_36 = arith.constant 0 : index
      %c0_37 = arith.constant 0 : index
      %c0_38 = arith.constant 0 : index
      %55 = vector.load %arg2[%c0_36, %c0_37, %c0_38] : memref<1x16x128xbf16, #tpu.memory_space<vmem>>, vector<1x16x128xbf16>
      %56 = vector.shape_cast %55 : vector<1x16x128xbf16> to vector<16x128xbf16>
      %c0_39 = arith.constant 0 : index
      %c0_40 = arith.constant 0 : index
      %57 = vector.load %arg4[%c0_39, %c0_40] : memref<128x128xbf16, #tpu.memory_space<vmem>>, vector<128x128xbf16>
      %cst_41 = arith.constant dense<0.000000e+00> : vector<16x128xf32>
      %58 = tpu.matmul %56, %57, %cst_41 {dimension_numbers = #tpu.dot_dimension_numbers<[1], [0], [0], [1], [0, 0, 1, 1], [], []>} : vector<16x128xbf16>, vector<128x128xbf16>, vector<16x128xf32> -> vector<16x128xf32>
      %c0_42 = arith.constant 0 : index
      %c0_43 = arith.constant 0 : index
      %59 = vector.load %arg5[%c0_42, %c0_43] : memref<1x128xf32, #tpu.memory_space<vmem>>, vector<1x128xf32>
      %60 = vector.broadcast %59 : vector<1x128xf32> to vector<16x128xf32>
      %61 = arith.addf %58, %60 : vector<16x128xf32>
      %62 = arith.truncf %61 : vector<16x128xf32> to vector<16x128xbf16>
      %63 = vector.shape_cast %62 : vector<16x128xbf16> to vector<1x16x128xbf16>
      %c0_44 = arith.constant 0 : index
      %c0_45 = arith.constant 0 : index
      %c0_46 = arith.constant 0 : index
      %64 = vector.load %arg9[%c0_44, %c0_45, %c0_46] : memref<1x16x128xbf16, #tpu.memory_space<vmem>>, vector<1x16x128xbf16>
      tpu.vector_store %arg9[%c0_44, %c0_45, %c0_46], %63 {strides = array<i32>} : memref<1x16x128xbf16, #tpu.memory_space<vmem>>, vector<1x16x128xbf16>,
      %cst_47 = arith.constant 0xFF800000 : f32
      %65 = vector.broadcast %cst_47 : f32 to vector<1x16x1xf32>
      %c0_48 = arith.constant 0 : index
      %c0_49 = arith.constant 0 : index
      %c0_50 = arith.constant 0 : index
      %66 = vector.load %arg10[%c0_48, %c0_49, %c0_50] : memref<1x16x1xf32, #tpu.memory_space<vmem>>, vector<1x16x1xf32>
      tpu.vector_store %arg10[%c0_48, %c0_49, %c0_50], %65 {strides = array<i32>} : memref<1x16x1xf32, #tpu.memory_space<vmem>>, vector<1x16x1xf32>,
      %cst_51 = arith.constant 0.000000e+00 : f32
      %67 = vector.broadcast %cst_51 : f32 to vector<1x16x1xf32>
      %c0_52 = arith.constant 0 : index
      %c0_53 = arith.constant 0 : index
      %c0_54 = arith.constant 0 : index
      %68 = vector.load %arg11[%c0_52, %c0_53, %c0_54] : memref<1x16x1xf32, #tpu.memory_space<vmem>>, vector<1x16x1xf32>
      tpu.vector_store %arg11[%c0_52, %c0_53, %c0_54], %67 {strides = array<i32>} : memref<1x16x1xf32, #tpu.memory_space<vmem>>, vector<1x16x1xf32>,
      %cst_55 = arith.constant 0.000000e+00 : f32
      %69 = vector.broadcast %cst_55 : f32 to vector<1x16x128xf32>
      %c0_56 = arith.constant 0 : index
      %c0_57 = arith.constant 0 : index
      %c0_58 = arith.constant 0 : index
      %70 = vector.load %arg12[%c0_56, %c0_57, %c0_58] : memref<1x16x128xf32, #tpu.memory_space<vmem>>, vector<1x16x128xf32>
      tpu.vector_store %arg12[%c0_56, %c0_57, %c0_58], %69 {strides = array<i32>} : memref<1x16x128xf32, #tpu.memory_space<vmem>>, vector<1x16x128xf32>,
    } else {
    }
    %c0 = arith.constant 0 : index
    %c0_1 = arith.constant 0 : index
    %c0_2 = arith.constant 0 : index
    %3 = vector.load %arg3[%c0, %c0_1, %c0_2] : memref<1x16x128xbf16, #tpu.memory_space<vmem>>, vector<1x16x128xbf16>
    %4 = vector.shape_cast %3 : vector<1x16x128xbf16> to vector<16x128xbf16>
    %c0_3 = arith.constant 0 : index
    %c0_4 = arith.constant 0 : index
    %5 = vector.load %arg6[%c0_3, %c0_4] : memref<128x256xbf16, #tpu.memory_space<vmem>>, vector<128x256xbf16>
    %cst = arith.constant dense<0.000000e+00> : vector<16x256xf32>
    %6 = tpu.matmul %4, %5, %cst {dimension_numbers = #tpu.dot_dimension_numbers<[1], [0], [0], [1], [0, 0, 1, 1], [], []>} : vector<16x128xbf16>, vector<128x256xbf16>, vector<16x256xf32> -> vector<16x256xf32>
    %7 = vector.extract_strided_slice %6 {offsets = [0, 0], sizes = [16, 128], strides = [1, 1]} : vector<16x256xf32> to vector<16x128xf32>
    %c0_5 = arith.constant 0 : index
    %c0_6 = arith.constant 0 : index
    %8 = vector.load %arg7[%c0_5, %c0_6] : memref<1x256xf32, #tpu.memory_space<vmem>>, vector<1x128xf32>
    %9 = vector.broadcast %8 : vector<1x128xf32> to vector<16x128xf32>
    %10 = arith.addf %7, %9 : vector<16x128xf32>
    %11 = arith.truncf %10 : vector<16x128xf32> to vector<16x128xbf16>
    %12 = vector.shape_cast %11 : vector<16x128xbf16> to vector<1x16x128xbf16>
    %13 = vector.extract_strided_slice %6 {offsets = [0, 128], sizes = [16, 128], strides = [1, 1]} : vector<16x256xf32> to vector<16x128xf32>
    %c0_7 = arith.constant 0 : index
    %c128 = arith.constant 128 : index
    %14 = vector.load %arg7[%c0_7, %c128] : memref<1x256xf32, #tpu.memory_space<vmem>>, vector<1x128xf32>
    %15 = vector.broadcast %14 : vector<1x128xf32> to vector<16x128xf32>
    %16 = arith.addf %13, %15 : vector<16x128xf32>
    %17 = arith.truncf %16 : vector<16x128xf32> to vector<16x128xbf16>
    %18 = vector.shape_cast %17 : vector<16x128xbf16> to vector<1x16x128xbf16>
    %c0_8 = arith.constant 0 : index
    %c0_9 = arith.constant 0 : index
    %c0_10 = arith.constant 0 : index
    %19 = vector.load %arg9[%c0_8, %c0_9, %c0_10] : memref<1x16x128xbf16, #tpu.memory_space<vmem>>, vector<1x16x128xbf16>
    %cst_11 = arith.constant dense<0.000000e+00> : vector<1x16x16xf32>
    %20 = tpu.matmul %19, %12, %cst_11 {dimension_numbers = #tpu.dot_dimension_numbers<[2], [2], [1], [1], [0, 0, 0, 1, 1, 1], [0], [0]>} : vector<1x16x128xbf16>, vector<1x16x128xbf16>, vector<1x16x16xf32> -> vector<1x16x16xf32>
    %c16_i32 = arith.constant 16 : i32
    %21 = arith.muli %arg1, %c16_i32 : i32
    %22 = tpu.iota {dimensions = array<i32: 2>} : vector<1x16x16xi32>
    %23 = vector.broadcast %21 : i32 to vector<1x16x16xi32>
    %24 = arith.addi %23, %22 : vector<1x16x16xi32>
    %c8_i32 = arith.constant 8 : i32
    %25 = vector.broadcast %c8_i32 : i32 to vector<1x16x16xi32>
    %26 = arith.cmpi slt, %24, %25 : vector<1x16x16xi32>
    %cst_12 = arith.constant -1.000000e+30 : f32
    %27 = vector.broadcast %cst_12 : f32 to vector<1x16x16xf32>
    %28 = arith.select %26, %20, %27 : vector<1x16x16xi1>, vector<1x16x16xf32>
    %c0_13 = arith.constant 0 : index
    %c0_14 = arith.constant 0 : index
    %c0_15 = arith.constant 0 : index
    %29 = vector.load %arg10[%c0_13, %c0_14, %c0_15] : memref<1x16x1xf32, #tpu.memory_space<vmem>>, vector<1x16x1xf32>
    %cst_16 = arith.constant dense<0xFF800000> : vector<1x16xf32>
    %30 = vector.multi_reduction <maximumf>, %28, %cst_16 [2] : vector<1x16x16xf32> to vector<1x16xf32>
    %31 = vector.shape_cast %30 : vector<1x16xf32> to vector<1x16x1xf32>
    %32 = arith.maximumf %29, %31 : vector<1x16x1xf32>
    %33 = arith.subf %29, %32 : vector<1x16x1xf32>
    %34 = math.exp %33 : vector<1x16x1xf32>
    %35 = vector.broadcast %32 : vector<1x16x1xf32> to vector<1x16x16xf32>
    %36 = arith.subf %28, %35 : vector<1x16x16xf32>
    %37 = math.exp %36 : vector<1x16x16xf32>
    %c0_17 = arith.constant 0 : index
    %c0_18 = arith.constant 0 : index
    %c0_19 = arith.constant 0 : index
    %38 = vector.load %arg11[%c0_17, %c0_18, %c0_19] : memref<1x16x1xf32, #tpu.memory_space<vmem>>, vector<1x16x1xf32>
    %39 = arith.mulf %34, %38 : vector<1x16x1xf32>
    %cst_20 = arith.constant dense<0.000000e+00> : vector<1x16xf32>
    %40 = vector.multi_reduction <add>, %37, %cst_20 [2] : vector<1x16x16xf32> to vector<1x16xf32>
    %41 = vector.shape_cast %40 : vector<1x16xf32> to vector<1x16x1xf32>
    %42 = arith.addf %39, %41 : vector<1x16x1xf32>
    %c0_21 = arith.constant 0 : index
    %c0_22 = arith.constant 0 : index
    %c0_23 = arith.constant 0 : index
    %43 = vector.load %arg11[%c0_21, %c0_22, %c0_23] : memref<1x16x1xf32, #tpu.memory_space<vmem>>, vector<1x16x1xf32>
    tpu.vector_store %arg11[%c0_21, %c0_22, %c0_23], %42 {strides = array<i32>} : memref<1x16x1xf32, #tpu.memory_space<vmem>>, vector<1x16x1xf32>,
    %c0_24 = arith.constant 0 : index
    %c0_25 = arith.constant 0 : index
    %c0_26 = arith.constant 0 : index
    %44 = vector.load %arg12[%c0_24, %c0_25, %c0_26] : memref<1x16x128xf32, #tpu.memory_space<vmem>>, vector<1x16x128xf32>
    %45 = vector.broadcast %34 : vector<1x16x1xf32> to vector<1x16x128xf32>
    %46 = arith.mulf %45, %44 : vector<1x16x128xf32>
    %47 = arith.truncf %37 : vector<1x16x16xf32> to vector<1x16x16xbf16>
    %cst_27 = arith.constant dense<0.000000e+00> : vector<1x16x128xf32>
    %48 = tpu.matmul %47, %18, %cst_27 {dimension_numbers = #tpu.dot_dimension_numbers<[2], [1], [1], [2], [0, 0, 0, 1, 1, 2], [0], [0]>} : vector<1x16x16xbf16>, vector<1x16x128xbf16>, vector<1x16x128xf32> -> vector<1x16x128xf32>
    %49 = arith.addf %46, %48 : vector<1x16x128xf32>
    %c0_28 = arith.constant 0 : index
    %c0_29 = arith.constant 0 : index
    %c0_30 = arith.constant 0 : index
    %50 = vector.load %arg12[%c0_28, %c0_29, %c0_30] : memref<1x16x128xf32, #tpu.memory_space<vmem>>, vector<1x16x128xf32>
    tpu.vector_store %arg12[%c0_28, %c0_29, %c0_30], %49 {strides = array<i32>} : memref<1x16x128xf32, #tpu.memory_space<vmem>>, vector<1x16x128xf32>,
    %c0_31 = arith.constant 0 : index
    %c0_32 = arith.constant 0 : index
    %c0_33 = arith.constant 0 : index
    %51 = vector.load %arg10[%c0_31, %c0_32, %c0_33] : memref<1x16x1xf32, #tpu.memory_space<vmem>>, vector<1x16x1xf32>
    tpu.vector_store %arg10[%c0_31, %c0_32, %c0_33], %32 {strides = array<i32>} : memref<1x16x1xf32, #tpu.memory_space<vmem>>, vector<1x16x1xf32>,
    %c0_i32_34 = arith.constant 0 : i32
    %52 = arith.cmpi eq, %arg1, %c0_i32_34 : i32
    %53 = arith.extui %52 : i1 to i32
    %c0_i32_35 = arith.constant 0 : i32
    %54 = arith.cmpi ne, %53, %c0_i32_35 : i32
    scf.if %54 {
      %c0_36 = arith.constant 0 : index
      %c0_37 = arith.constant 0 : index
      %c0_38 = arith.constant 0 : index
      %55 = vector.load %arg12[%c0_36, %c0_37, %c0_38] : memref<1x16x128xf32, #tpu.memory_space<vmem>>, vector<1x16x128xf32>
      %c0_39 = arith.constant 0 : index
      %c0_40 = arith.constant 0 : index
      %c0_41 = arith.constant 0 : index
      %56 = vector.load %arg11[%c0_39, %c0_40, %c0_41] : memref<1x16x1xf32, #tpu.memory_space<vmem>>, vector<1x16x1xf32>
      %57 = tpu.reciprocal %56 {approx = true} : vector<1x16x1xf32> -> vector<1x16x1xf32>
      %58 = vector.broadcast %57 : vector<1x16x1xf32> to vector<1x16x128xf32>
      %59 = arith.mulf %55, %58 : vector<1x16x128xf32>
      %60 = arith.truncf %59 : vector<1x16x128xf32> to vector<1x16x128xbf16>
      %c0_42 = arith.constant 0 : index
      %c0_43 = arith.constant 0 : index
      %c0_44 = arith.constant 0 : index
      %61 = vector.load %arg8[%c0_42, %c0_43, %c0_44] : memref<1x16x128xbf16, #tpu.memory_space<vmem>>, vector<1x16x128xbf16>
      tpu.vector_store %arg8[%c0_42, %c0_43, %c0_44], %60 {strides = array<i32>} : memref<1x16x128xbf16, #tpu.memory_space<vmem>>, vector<1x16x128xbf16>,
    } else {
    }
    return
  }
  func.func @transform_0(%arg0: i32, %arg1: i32) -> (i32, i32, i32) {
    %c0_i32 = arith.constant 0 : i32
    %c0_i32_0 = arith.constant 0 : i32
    %c0_i32_1 = arith.constant 0 : i32
    return %arg0, %c0_i32, %c0_i32_0 : i32, i32, i32
  }
  func.func @transform_1(%arg0: i32, %arg1: i32) -> (i32, i32, i32) {
    %c0_i32 = arith.constant 0 : i32
    %c0_i32_0 = arith.constant 0 : i32
    return %arg0, %arg1, %c0_i32 : i32, i32, i32
  }
  func.func @transform_2(%arg0: i32, %arg1: i32) -> (i32, i32) {
    %c0_i32 = arith.constant 0 : i32
    %c0_i32_0 = arith.constant 0 : i32
    %c0_i32_1 = arith.constant 0 : i32
    return %c0_i32, %c0_i32_0 : i32, i32
  }
  func.func @transform_3(%arg0: i32, %arg1: i32) -> (i32, i32) {
    %c0_i32 = arith.constant 0 : i32
    %c0_i32_0 = arith.constant 0 : i32
    %c0_i32_1 = arith.constant 0 : i32
    return %c0_i32, %c0_i32_0 : i32, i32
  }
  func.func @transform_4(%arg0: i32, %arg1: i32) -> (i32, i32) {
    %c0_i32 = arith.constant 0 : i32
    %c0_i32_0 = arith.constant 0 : i32
    %c0_i32_1 = arith.constant 0 : i32
    return %c0_i32, %c0_i32_0 : i32, i32
  }
  func.func @transform_5(%arg0: i32, %arg1: i32) -> (i32, i32) {
    %c0_i32 = arith.constant 0 : i32
    %c0_i32_0 = arith.constant 0 : i32
    %c0_i32_1 = arith.constant 0 : i32
    return %c0_i32, %c0_i32_0 : i32, i32
  }
  func.func @transform_6(%arg0: i32, %arg1: i32) -> (i32, i32, i32) {
    %c0_i32 = arith.constant 0 : i32
    %c0_i32_0 = arith.constant 0 : i32
    %c0_i32_1 = arith.constant 0 : i32
    return %arg0, %c0_i32, %c0_i32_0 : i32, i32, i32
  }
}

</mosaic_0001>

<bundles_post_ra>
// kernel: tpu_custom_call.1
= control target key start
LH: loop header
LB: loop body
LE: loop exit
PB: predicated region body
PF: predicated region fallthrough
CT: control target
= control target key end

     0   :  { %s1680_s0 = inlined_call_operand.hbm [shape: bf16[2,16,128], index: 0, kind: input, shape index: {}]   ;;  %s1681_s1 = inlined_call_operand.hbm [shape: bf16[2,16,128], index: 1, kind: input, shape index: {}]   ;;  %s1682_s2 = inlined_call_operand.hbm [shape: bf16[128,128], index: 2, kind: input, shape index: {}]   ;;  %s1683_s3 = inlined_call_operand.vmem [shape: f32[1,128], index: 3, kind: input, shape index: {}]   ;;  %s1684_s4 = inlined_call_operand.hbm [shape: bf16[128,256], index: 4, kind: input, shape index: {}]   ;;  %s1685_s5 = inlined_call_operand.vmem [shape: f32[1,256], index: 5, kind: input, shape index: {}]   ;;  %s1686_s6 = inlined_call_operand.hbm [shape: bf16[2,16,128], index: 6, kind: output, shape index: {}]  }
   0x1   :  { %1695 = sst [smem:[#allocation25_spill]] %s1682_s2 }
   0x2   :  { %1696 = sst [smem:[#allocation26_spill]] %s1684_s4 }
   0x3   :  { %11 = vsyncpa [#allocation7], 0 }
   0x4   :  { %13 = vsyncpa [#allocation7 + $0x1], 0 }
   0x5   :  { %14 = vsyncpa [#allocation10], 0 }
   0x6   :  { %16 = vsyncpa [#allocation10 + $0x1], 0 }
   0x7   :  { %17 = vsyncpa [#allocation13], 0 }
   0x8   :  { %18 = vsyncpa [#allocation8], 0 }
   0x9   :  { %20 = vsyncpa [#allocation8 + $0x1], 0  ;;  %s1468_s21 = smov 0   ;;  %s1470_s22 = smov 0  }
   0xa   :  { %s1472_s23 = smov 0   ;;  %s1474_s24 = smov 0  }
   0xb   :  { %s1476_s25 = smov 0   ;;  %s1478_s26 = smov 0  }
   0xc LB: > { %1697 = sst [smem:[#allocation20_spill]] %s1408_s23  ;;  %s1499_s27 = sadd.s32 4294967295, %s1420_s26   ;;  %s1420_s26 = sphi %s1478_s26, %s26_s26   ;;  %s1416_s25 = sphi %s1476_s25, %s1715_s25   ;;  %s1412_s24 = sphi %s1474_s24, %s1714_s24   ;;  %s1408_s23 = sphi %s1472_s23, %s1713_s23   ;;  %s1404_s22 = sphi %s1470_s22, %s1717_s22   ;;  %s1400_s21 = sphi %s1468_s21, %s1716_s21  }
   0xd   : > { %1698 = sst [smem:[#allocation21_spill]] %s1416_s25  ;;  %s920_s28 = sadd.s32 4294967294, %s1420_s26  }
   0xe   : > { %p58_p0 = scmp.ne.s32.totalorder %s1404_s22, %s1400_s21  ;;  %p59_p1 = scmp.eq.s32.totalorder %s1499_s27, 0 }
   0xf   : > { %p194_p2 = scmp.eq.s32.totalorder %s1499_s27, 1  ;;  %p200_p3 = scmp.eq.s32.totalorder %s920_s28, 1 }
  0x10   : > { %p1508_p4 = por %p59_p1, %p58_p0  ;;  %p921_p5 = scmp.ge.s32.totalorder %s1420_s26, 1 }
  0x11   : > { %p1513_p6 = por %p200_p3, %p58_p0  ;;  %p207_p7 = scmp.lt.s32.totalorder %s1420_s26, 3 }
  0x12   : > { %s1702_s2 = sld [smem:[#allocation25_spill]]  ;;  %s1422_s11 = smov [#allocation11]  }
  0x13   : > { %s1700_s30 = scalar_select %p1513_p6, 1, 0 }
  0x14   : > { %p1521_p8 = pnand %p921_p5, %p207_p7  ;;  %s220_s12 = sshll.u32 %s1422_s11, 4  ;;  %s221_s12 = int_to_ptr.vmem [resolvable:$true] %s220_s12 }
  0x15   : > { %1701 = sst [smem:[#allocation22_spill]] %s1700_s30  ;;  %p924_p11 = scmp.ge.s32.totalorder %s1420_s26, 2 }
  0x16   : > { %p1105_p9 = pneg %p1521_p8  ;;  %s1704_s4 = sld [smem:[#allocation26_spill]] }
  0x17   : > { %s1687_s16 = smov 64   ;;  %s1689_s17 = smov 4  }
  0x18   : > { %s218_s9 = sshll.u32 %s1702_s2, 4  ;;  %p1106_p10 = pnand %p1105_p9, %p59_p1  ;;  %s219_s9 = int_to_ptr.hbm [resolvable:$true] %s218_s9 }
  0x19   : > { %s1425_s18 = smov [#allocation12]   ;;  %s1426_s20 = smov 128  }
  0x1a   : > { %1108 = dma.hbm_to_vmem [thread:$0]  (!%p1106_p10), %s219_s9, 1024, %s221_s12, [#allocation10], %s1687_s16, %s1687_s16, %s1689_s17  }
  0x1b   : > { %s237_s19 = sshll.u32 %s1425_s18, 4  ;;  %s1427_s28 = smov 8   ;;  %s238_s19 = int_to_ptr.vmem [resolvable:$true] %s237_s19 }
  0x1c   : > { %s235_s15 = sshll.u32 %s1704_s4, 4  ;;  %s38_s7 = sadd.s32 1, %s1416_s25  ;;  %s236_s15 = int_to_ptr.hbm [resolvable:$true] %s235_s15 }
  0x1d   : > { %1111 = dma.hbm_to_vmem [thread:$0]  (!%p1106_p10), %s236_s15, 2048, %s238_s19, [#allocation13], %s1426_s20, %s1426_s20, %s1427_s28  }
  0x1e   : > { %s45_s8 = sadd.s32 1, %s1408_s23  ;;  %p40_p12 = scmp.ge.s32.totalorder %s38_s7, 2 }
  0x1f   : > { %p52_p13 = scmp.ne.s32.totalorder %s1408_s23, %s1404_s22  ;;  %p53_p0 = scmp.eq.s32.totalorder %s1420_s26, 0 }
  0x20   : > { %p1125_p3 = scmp.lt.s32.totalorder %s1420_s26, 2  ;;  %s1719_s7 = smov (%p40_p12, %s38_s7), 0 }
  0x21   : > { %1705 = sst [smem:[#allocation23_spill]] %s1719_s7  ;;  %p1544_p5 = por %p53_p0, %p52_p13 }
  0x22   : > { %p1550_p7 = por %p194_p2, %p52_p13  ;;  %s42_s12 = ssub.s32 %s1416_s25, %s1719_s7 }
  0x23   : > { %s254_s13 = sand.u32 1, %s1408_s23   ;;  %p43_p9 = scmp.eq.s32.totalorder %s42_s12, 0 }
  0x24   : > { %s925_s14 = sshll.u32 %s254_s13, 3  ;;  %s1051_s15 = sshll.u32 %s1416_s25, 3 }
  0x25   : > { %s1559_s18 = scalar_select %p43_p9, %s1408_s23, %s45_s8  }
  0x26   : > { %s263_s28 = scalar_lea.hbm %s1680_s0, %s1051_s15  ;;  %s258_s17 = scalar_lea.vmem [#allocation6], %s925_s14 }
  0x27   : > { %1708 = sst [smem:[#allocation24_spill]] %s1559_s18  ;;  %s264_s16 = sshll.u32 %s263_s28, 4  ;;  %s265_s16 = int_to_ptr.hbm [resolvable:$true] %s264_s16 }
  0x28   : > { %s266_s2 = sshll.u32 %s258_s17, 4  ;;  %p1113_p2 = pnand %p1125_p3, %p1544_p5  ;;  %s267_s2 = int_to_ptr.vmem [resolvable:$true] %s266_s2 }
  0x29   : > { %s287_s12 = scalar_lea.hbm %s1681_s1, %s1051_s15  ;;  %s280_s25 = scalar_lea.vmem [#allocation9], %s925_s14 }
  0x2a   : > { %s290_s8 = sshll.u32 %s280_s25, 4  ;;  %s288_s18 = sshll.u32 %s287_s12, 4  ;;  %s289_s18 = int_to_ptr.hbm [resolvable:$true] %s288_s18  ;;  %s291_s8 = int_to_ptr.vmem [resolvable:$true] %s290_s8 }
  0x2b   : > { %s255_s23 = scalar_lea.sflag [#allocation7], %s254_s13  ;;  %s1709_s30 = smov 4  }
  0x2c   : > { %s1710_s19 = smov 64   ;;  %s276_s17 = sand.u32 1, %s1420_s26  }
  0x2d   : > { %1115 = dma.hbm_to_vmem [thread:$0]  (!%p1113_p2), %s265_s16, 128, %s267_s2, %s255_s23, %s1710_s19, %s1710_s19, %s1709_s30  }
  0x2e   : > { %s277_s20 = scalar_lea.sflag [#allocation10], %s276_s17  ;;  %302 = sbr.rel (%p1521_p8) target bundleno = 886 (0x376), region = 44 }
  0x2f   : > { %1118 = dma.hbm_to_vmem [thread:$0]  (!%p1113_p2), %s289_s18, 128, %s291_s8, %s277_s20, %s1710_s19, %s1710_s19, %s1709_s30  }
  0x30   : > { %s1581_s4 = sand.u32 (!%p1521_p8), 1, %s1404_s22  }
  0x31   : > { %s1584_s25 = sshll.u32 (!%p1521_p8), %s1581_s4, 3  ;;  %s305_s2 = scalar_lea.sflag (!%p1521_p8), [#allocation7], %s1581_s4 }
  0x32   : > { %s308_s23 = scalar_lea.vmem (!%p1521_p8), [#allocation6], %s1584_s25 }
  0x33   : > { %1379 = dma.done.wait (%p1508_p4), %s305_s2, 128  }
  0x34   : > { %1381 = vsyncadd (%p1508_p4), %s305_s2, 4294967168  ;;  %s314_s30 = sand.u32 1, %s1499_s27   ;;  %s318_s16 = scalar_lea.vmem [#allocation9], %s1584_s25 }
  0x35   : > { %s315_s10 = scalar_lea.sflag [#allocation10], %s314_s30 }
  0x36   : > { %1383 = dma.done.wait (%p1508_p4), %s315_s10, 128  }
  0x37   : > { %1385 = vsyncadd (%p1508_p4), %s315_s10, 4294967168 }
  0x38   : > { %1387 = dma.done.wait (%p59_p1), [#allocation10], 1024  }
  0x39   : > { %1389 = vsyncadd (%p59_p1), [#allocation10], 4294966272 }
  0x3a   : > { %1391 = dma.done.wait (%p59_p1), [#allocation13], 2048  }
  0x3b   : > { %1393 = vsyncadd (%p59_p1), [#allocation13], 4294965248  ;;  %v1061_v0 = vld [vmem:[#allocation11 + $0x38] sm:$0xff]  ;;  %v1035_v1 = vld [vmem:[#allocation12 + $0x70] sm:$0xf]  ;;  %vm463_vm0 = vcmask 7168   ;;  %v647_v63 = vlaneseq }
  0x3c   : > { %v1078_v2 = vld [vmem:[#allocation12 + $0x74] sm:$0xf0]  ;;  %v1027_v4 = vld [vmem:[#allocation12 + $0x60] sm:$0xf]  ;;  %v1076_v5 = vld [vmem:[#allocation12 + $0x64] sm:$0xf0]  ;;  %445 = vmatpush.bf16.msra.mxu0 %v1061_v0 }
  0x3d   : > { %v1036_v3 = vor.u32 %v1078_v2, %v1035_v1  ;;  %v1060_v6 = vld [vmem:[#allocation11 + $0x30] sm:$0xff]  ;;  %v1028_v7 = vor.u32 %v1076_v5, %v1027_v4  ;;  %v1074_v9 = vld [vmem:[#allocation12 + $0x54] sm:$0xf0]  ;;  %v1059_v10 = vld [vmem:[#allocation11 + $0x28] sm:$0xff]  ;;  %v1428_v59 = vmov -inf   ;;  %vm656_vm2 = vcmask 130048  }
  0x3e   : > { %v1019_v8 = vld [vmem:[#allocation12 + $0x50] sm:$0xf]  ;;  %v1011_v12 = vld [vmem:[#allocation12 + $0x40] sm:$0xf]  ;;  %v1072_v13 = vld [vmem:[#allocation12 + $0x44] sm:$0xf0] }
  0x3f   : > { %574 = vmatpush.bf16.msra.mxu1 %v1036_v3  ;;  %v1020_v11 = vor.u32 %v1074_v9, %v1019_v8  ;;  %v1058_v14 = vld [vmem:[#allocation11 + $0x20] sm:$0xff]  ;;  %v1012_v15 = vor.u32 %v1072_v13, %v1011_v12  ;;  %v1003_v16 = vld [vmem:[#allocation12 + $0x30] sm:$0xf]  ;;  %v1070_v17 = vld [vmem:[#allocation12 + $0x34] sm:$0xf0]  ;;  %464 = vst.msk [vmem:[#allocation3] sm:$0xff] %vm463_vm0, %v1428_v59 }
  0x40   : > { %446 = vmatpush.bf16.msra.mxu0 %v1060_v6  ;;  %v1057_v18 = vld [vmem:[#allocation11 + $0x18] sm:$0xff]  ;;  %v1004_v19 = vor.u32 %v1070_v17, %v1003_v16  ;;  %v995_v20 = vld [vmem:[#allocation12 + $0x20] sm:$0xf]  ;;  %v1068_v21 = vld [vmem:[#allocation12 + $0x24] sm:$0xf0]  ;;  %465 = vst.msk [vmem:[#allocation3 + $0x8] sm:$0xff] %vm463_vm0, %v1428_v59 }
  0x41   : > { %v1056_v22 = vld [vmem:[#allocation11 + $0x10] sm:$0xff]  ;;  %v996_v23 = vor.u32 %v1068_v21, %v995_v20  ;;  %v1066_v25 = vld [vmem:[#allocation12 + $0x14] sm:$0xf0]  ;;  %v1055_v26 = vld [vmem:[#allocation11 + $0x8] sm:$0xff]  ;;  %v648_v3 = vand.u32 127, %v647_v63  ;;  %v1429_v20 = vmov 0  }
  0x42   : > { %v987_v24 = vld [vmem:[#allocation12 + $0x10] sm:$0xf]  ;;  %v979_v28 = vld [vmem:[#allocation12] sm:$0xf]  ;;  %v1064_v29 = vld [vmem:[#allocation12 + $0x4] sm:$0xf0]  ;;  %1188 = vset.pattern.permute.xlu1 %v1429_v20  ;;  %1189 = vset.pattern.permute.xlu0 %v1429_v20 }
  0x43   : > { %575 = vmatpush.bf16.msra.mxu1 %v1028_v7  ;;  %v988_v27 = vor.u32 %v1066_v25, %v987_v24  ;;  %v1054_v30 = vld [vmem:[#allocation11] sm:$0xff]  ;;  %v980_v31 = vor.u32 %v1064_v29, %v979_v28  ;;  %v1610_v33 = vld [vmem:[%s318_s16] sm:$0xff]  ;;  %v1029_v55 = vld [vmem:[#allocation12 + $0x68] sm:$0xf0]  ;;  %vm651_vm1 = vcmp.lt.s32.totalorder %v648_v3, 8  ;;  %1190 = vset.pattern.permute.xlu2 %v1429_v20  ;;  %v1430_v21 = vmov 0.0  }
  0x44   : > { %447 = vmatpush.bf16.msra.mxu0 %v1059_v10  ;;  %v1053_v32 = vld [vmem:[%s308_s23] sm:$0xff]  ;;  %v1192_v36 = vld [vmem:[%s1685_s5] ss:$0 sm:$0xff]  ;;  %v1077_v51 = vld [vmem:[#allocation12 + $0x74] sm:$0xf]  ;;  %466 = vst.msk [vmem:[#allocation4] sm:$0xff] %vm463_vm0, %v1430_v21 }
  0x45   : > { %v1191_v37 = vld [vmem:[%s1683_s3] ss:$0 sm:$0xff]  ;;  %v1037_v52 = vld [vmem:[#allocation12 + $0x78] sm:$0xf0]  ;;  %v1075_v53 = vld [vmem:[#allocation12 + $0x64] sm:$0xf] }
  0x46   : > { %v1040_v54 = vor.u32 %v1077_v51, %v1037_v52  ;;  %v1032_v56 = vor.u32 %v1075_v53, %v1029_v55  ;;  %v1073_v57 = vld [vmem:[#allocation12 + $0x54] sm:$0xf]  ;;  %v1021_v58 = vld [vmem:[#allocation12 + $0x58] sm:$0xf0]  ;;  %v1071_v61 = vld [vmem:[#allocation12 + $0x44] sm:$0xf] }
  0x47   : > { %576 = vmatpush.bf16.msra.mxu1 %v1020_v11  ;;  %v1024_v60 = vor.u32 %v1073_v57, %v1021_v58  ;;  %v1013_v62 = vld [vmem:[#allocation12 + $0x48] sm:$0xf0]  ;;  %v1069_v1 = vld [vmem:[#allocation12 + $0x34] sm:$0xf]  ;;  %v1005_v2 = vld [vmem:[#allocation12 + $0x38] sm:$0xf0] }
  0x48   : > { %448 = vmatpush.bf16.msra.mxu0 %v1058_v14  ;;  %588 = vmatpush.bf16.msra.mxu2 %v1040_v54  ;;  %v1016_v0 = vor.u32 %v1071_v61, %v1013_v62  ;;  %v1008_v4 = vor.u32 %v1069_v1, %v1005_v2  ;;  %v1067_v5 = vld [vmem:[#allocation12 + $0x24] sm:$0xf]  ;;  %v997_v6 = vld [vmem:[#allocation12 + $0x28] sm:$0xf0]  ;;  %v1065_v8 = vld [vmem:[#allocation12 + $0x14] sm:$0xf] }
  0x49   : > { %v1000_v7 = vor.u32 %v1067_v5, %v997_v6  ;;  %v989_v9 = vld [vmem:[#allocation12 + $0x18] sm:$0xf0]  ;;  %v1063_v14 = vld [vmem:[#allocation12 + $0x4] sm:$0xf]  ;;  %467 = vst.msk [vmem:[#allocation4 + $0x8] sm:$0xff] %vm463_vm0, %v1430_v21  ;;  %s1080_s15 = sshll.u32 %s1412_s24, 3 }
  0x4a   : > { %v992_v13 = vor.u32 %v1065_v8, %v989_v9  ;;  %s789_s12 = scalar_lea.hbm %s1686_s6, %s1080_s15  ;;  %s362_s8 = scalar_lea.vmem [#allocation14], %s1584_s25 }
  0x4b   : > { %577 = vmatpush.bf16.msra.mxu1 %v1012_v15  ;;  %v981_v15 = vld [vmem:[#allocation12 + $0x8] sm:$0xf0]  ;;  %v687_v59 = vld [vmem:[#allocation4] sm:$0xff]  ;;  %s1643_s19 = sshll.u32 %s362_s8, 4  ;;  %s792_s17 = sshll.u32 %s789_s12, 4  ;;  %s791_s19 = int_to_ptr.vmem [resolvable:$true] %s1643_s19  ;;  %s793_s17 = int_to_ptr.hbm [resolvable:$true] %s792_s17 }
  0x4c   : > { %449 = vmatpush.bf16.msra.mxu0 %v1057_v18  ;;  %589 = vmatpush.bf16.msra.mxu2 %v1032_v56  ;;  %v984_v16 = vor.u32 %v1063_v14, %v981_v15  ;;  %s778_s24 = scalar_lea.sflag [#allocation8], %s1581_s4  ;;  %s1340_s20 = sshra.s32 %s793_s17, 4  ;;  %s1341_s20 = int_to_ptr.hbm [resolvable:$true] %s1340_s20 }
  0x4d   : > { %s1342_s2 = scalar_lea.hbm %s1341_s20, 8  ;;  %s1346_s30 = scalar_lea.hbm %s1686_s6, 16 }
  0x4e   : > { %p1343_p1 = scmp.ne.s32.totalorder %s1341_s20, %s1342_s2  ;;  %p1347_p10 = scmp.lt.s32.totalorder %s1341_s20, %s1686_s6 }
  0x4f   : > { %578 = vmatpush.bf16.msra.mxu1 %v1004_v19  ;;  %p1348_p12 = scmp.lt.s32.totalorder %s1346_s30, %s1342_s2 }
  0x50   : > { %450 = vmatpush.bf16.msra.mxu0 %v1056_v22  ;;  %590 = vmatpush.bf16.msra.mxu2 %v1024_v60  ;;  %v654_v22 = vld [vmem:[#allocation3] sm:$0xff]  ;;  %v688_v63 = vld [vmem:[#allocation4 + $0x8] sm:$0xff]  ;;  %p1344_p4 = pnand %p1343_p1, %p1550_p7 }
  0x51   : > { %p1349_p13 = por %p1348_p12, %p1347_p10 }
  0x52   : > { %p1345_p8 = pneg %p1344_p4 }
  0x53   : > { %579 = vmatpush.bf16.msra.mxu1 %v996_v23 }
  0x54   : > { %451 = vmatpush.bf16.msra.mxu0 %v1055_v26  ;;  %591 = vmatpush.bf16.msra.mxu2 %v1016_v0  ;;  %p1350_p0 = pnand %p1349_p13, %p1345_p8 }
  0x57   : > { %580 = vmatpush.bf16.msra.mxu1 %v988_v27  ;;  %v655_v27 = vld [vmem:[#allocation3 + $0x8] sm:$0xff] }
  0x58   : > { %452 = vmatpush.bf16.msra.mxu0 %v1054_v30  ;;  %592 = vmatpush.bf16.msra.mxu2 %v1008_v4 }
  0x5b   : > { %581 = vmatpush.bf16.msra.mxu1 %v980_v31  ;;  %453 = vmatmul.bf16.vlgmr.msra.gmra.mxu0 %v1053_v32 }
  0x5c   : > { %593 = vmatpush.bf16.msra.mxu2 %v1000_v7 }
  0x5e   : > { %582 = vmatmul.bf16.vlgmr.msra.gmra.mxu1 %v1610_v33 }
  0x60   : > { %594 = vmatpush.bf16.msra.mxu2 %v992_v13 }
  0x64   : > { %595 = vmatpush.bf16.msra.mxu2 %v984_v16 }
  0x67   : > { %596 = vmatmul.bf16.vlgmr.msra.gmra.mxu2 %v1610_v33 }
  0xd8   : > { %v454_v34 = vpop.f32.mrf.mxu0 }
  0xd9   : > { %v455_v40 = vadd.f32 %v1191_v37, %v454_v34 }
  0xdb   : > { %v583_v35 = vpop.f32.mrf.mxu1 }
  0xdc   : > { %v606_v38 = vadd.f32 %v1192_v36, %v583_v35  ;;  %v1193_v35 = vld [vmem:[%s1685_s5 + $0x1] ss:$0 sm:$0xff] }
  0xde   : > { %v608_v43 = vpack.c.bf16 %v606_v38, %v606_v38 }
  0xe0   : > { %v456_v39 = vpop.f32.mrf.mxu0  ;;  %v628_v47 = vunpack.c.l.b16 %v608_v43 }
  0xe1   : > { %v457_v41 = vadd.f32 %v1191_v37, %v456_v39 }
  0xe3   : > { %v585_v42 = vpop.f32.mrf.mxu1  ;;  %v1084_v45 = vpack.c.bf16 %v457_v41, %v455_v40 }
  0xe4   : > { %v607_v44 = vadd.f32 %v1192_v36, %v585_v42 }
  0xe5   : > { %1085 = vst [vmem:[#allocation2] sm:$0xff] %v1084_v45  }
  0xe6   : > { %v609_v46 = vpack.c.bf16 %v607_v44, %v607_v44 }
  0xe8   : > { %v629_v48 = vunpack.c.l.b16 %v609_v46 }
  0xea   : > { %v630_v49 = vpack.c.b16 %v629_v48, %v628_v47  ;;  %v597_v34 = vpop.f32.mrf.mxu2 }
  0xeb   : > { %v614_v37 = vadd.f32 %v1193_v35, %v597_v34 }
  0xec   : > { %639 = vmatpush.bf16.xpose.msra.mxu3 %v630_v49  ;;  %v1079_v50 = vld [vmem:[#allocation2] sm:$0xff] }
  0xed   : > { %v616_v39 = vpack.c.bf16 %v614_v37, %v614_v37 }
  0xef   : > { %v725_v41 = vunpack.c.l.b16 %v616_v39 }
  0xf2   : > { %v599_v36 = vpop.f32.mrf.mxu2 }
  0xf3   : > { %640 = vmatmul.bf16.vlgmr.msra.gmra.mxu3 %v1079_v50  ;;  %v615_v38 = vadd.f32 %v1193_v35, %v599_v36 }
  0xf5   : > { %v617_v40 = vpack.c.bf16 %v615_v38, %v615_v38 }
  0xf7   : > { %v726_v42 = vunpack.c.l.b16 %v617_v40 }
  0xf9   : > { %v727_v43 = vpack.c.b16 %v726_v42, %v725_v41 }
  0xfb   : > { %739 = vmatpush.bf16.msrb.mxu3 %v727_v43 }
 0x176   : > { %v641_v10 = vpop.f32.mrf.mxu3 }
 0x177   : > { %v652_v11 = vsel %vm651_vm1, %v641_v10, -1e+30 }
 0x178   : > { %v657_v12 = vsel %vm656_vm2, %v652_v11, -inf }
 0x179   : > { %658 = vmax.xlane.f32.xlu0 %v657_v12 }
 0x17e   : > { %v643_v17 = vpop.f32.mrf.mxu3 }
 0x17f   : > { %v653_v18 = vsel %vm651_vm1, %v643_v17, -1e+30 }
 0x180   : > { %v660_v19 = vsel %vm656_vm2, %v653_v18, -inf }
 0x181   : > { %661 = vmax.xlane.f32.xlu0 %v660_v19 }
 0x1ec   : > { %v659_v23 = vpop.xlane.xlu0 %658 }
 0x1ed   : > { %v663_v24 = vmax.f32 %v654_v22, %v659_v23 }
 0x1ef   : > { %v665_v25 = vsub.f32 %v654_v22, %v663_v24  ;;  %750 = vst.msk [vmem:[#allocation3] sm:$0xff] %vm463_vm0, %v663_v24  ;;  %673 = vperm.xlu1 %1188, %v663_v24  }
 0x1f1   : > { %v667_v26 = vmul.f32 1.442695, %v665_v25 }
 0x1f3   : > { %1194 = vpow2.f32 %v667_v26 }
 0x1f4   : > { %v662_v28 = vpop.xlane.xlu0 %661 }
 0x1f5   : > { %v664_v29 = vmax.f32 %v655_v27, %v662_v28 }
 0x1f7   : > { %v666_v30 = vsub.f32 %v655_v27, %v664_v29  ;;  %751 = vst.msk [vmem:[#allocation3 + $0x8] sm:$0xff] %vm463_vm0, %v664_v29  ;;  %678 = vperm.xlu1 %1188, %v664_v29  }
 0x1f9   : > { %v1195_v31 = vpop.eup %1194  ;;  %v669_v32 = vmul.f32 1.442695, %v666_v30 }
 0x1fa   : > { %706 = vperm.xlu0 %1189, %v1195_v31   ;;  %v689_v60 = vmul.f32 %v1195_v31, %v687_v59 }
 0x1fb   : > { %1196 = vpow2.f32 %v669_v32 }
 0x201   : > { %v1197_v33 = vpop.eup %1196 }
 0x202   : > { %711 = vperm.xlu1 %1188, %v1197_v33   ;;  %v690_v0 = vmul.f32 %v1197_v33, %v688_v63 }
 0x261   : > { %v674_v44 = vpop.permute.xlu1 %673 }
 0x262   : > { %v681_v45 = vsub.f32 %v652_v11, %v674_v44 }
 0x264   : > { %v683_v46 = vmul.f32 1.442695, %v681_v45 }
 0x266   : > { %1198 = vpow2.f32 %v683_v46 }
 0x269   : > { %v679_v47 = vpop.permute.xlu1 %678 }
 0x26a   : > { %v682_v48 = vsub.f32 %v653_v18, %v679_v47 }
 0x26c   : > { %v1199_v49 = vpop.eup %1198  ;;  %v685_v50 = vmul.f32 1.442695, %v682_v48  ;;  %v707_v9 = vpop.permute.xlu0 %706 }
 0x26d   : > { %v691_v51 = vsel %vm656_vm2, %v1199_v49, 0.0  ;;  %v716_v52 = vpack.c.bf16 %v1199_v49, %v1199_v49  ;;  %v714_v11 = vmul.f32 0.0, %v707_v9 }
 0x26e   : > { %1200 = vpow2.f32 %v685_v50  ;;  %692 = vadd.xlane.f32.xlu2 %v691_v51 }
 0x26f   : > { %v720_v56 = vunpack.c.l.b16 %v716_v52 }
 0x274   : > { %v1201_v53 = vpop.eup %1200  ;;  %v712_v8 = vpop.permute.xlu1 %711 }
 0x275   : > { %v717_v54 = vpack.c.bf16 %v1201_v53, %v1201_v53  ;;  %v694_v55 = vsel %vm656_vm2, %v1201_v53, 0.0  ;;  %v715_v12 = vmul.f32 0.0, %v712_v8 }
 0x276   : > { %695 = vadd.xlane.f32.xlu2 %v694_v55 }
 0x277   : > { %v721_v57 = vunpack.c.l.b16 %v717_v54 }
 0x279   : > { %v722_v58 = vpack.c.b16 %v721_v57, %v720_v56 }
 0x27b   : > { %1045 = vmatmul.msk.bf16.vlgmr.msrb.gmra.mxu3 %vm656_vm2, %v722_v58 }
 0x2e1   : > { %v693_v61 = vpop.xlane.xlu2 %692 }
 0x2e2   : > { %v697_v62 = vadd.f32 %v693_v61, %v689_v60 }
 0x2e4   : > { %700 = vst.msk [vmem:[#allocation4] sm:$0xff] %vm463_vm0, %v697_v62 }
 0x2e9   : > { %v696_v1 = vpop.xlane.xlu2 %695 }
 0x2ea   : > { %v698_v2 = vadd.f32 %v696_v1, %v690_v0 }
 0x2eb   : > { %v757_v3 = vld [vmem:[#allocation4] sm:$0xff] }
 0x2ec   : > { %701 = vst.msk [vmem:[#allocation4 + $0x8] sm:$0xff] %vm463_vm0, %v698_v2  ;;  %1202 = vrcp.f32 %v757_v3 }
 0x2f2   : > { %v1203_v4 = vpop.eup %1202 }
 0x2f3   : > { %763 = vperm.xlu2 %1190, %v1203_v4   ;;  %v758_v5 = vld [vmem:[#allocation4 + $0x8] sm:$0xff] }
 0x2f4   : > { %1204 = vrcp.f32 %v758_v5 }
 0x2fa   : > { %v1205_v6 = vpop.eup %1204 }
 0x2fb   : > { %768 = vperm.xlu1 %1188, %v1205_v6  }
 0x2fe   : > { %v741_v7 = vpop.f32.mrf.mxu3 }
 0x2ff   : > { %v746_v14 = vadd.f32 %v741_v7, %v714_v11 }
 0x306   : > { %v743_v10 = vpop.f32.mrf.mxu3 }
 0x307   : > { %v747_v15 = vadd.f32 %v743_v10, %v715_v12 }
 0x34d   : > { %v764_v13 = vpop.permute.xlu2 %763 }
 0x34e   : > { %v771_v17 = vmul.f32 %v764_v13, %v746_v14 }
 0x36d   : > { %v769_v16 = vpop.permute.xlu1 %768 }
 0x36e   : > { %v772_v18 = vmul.f32 %v769_v16, %v747_v15 }
 0x370   : > { %v1089_v19 = vpack.c.bf16 %v772_v18, %v771_v17 }
 0x372   : > { %1090 = vst [vmem:[%s362_s8] sm:$0xff] %v1089_v19  }
 0x373   : > { %1353 = shalt.err (!%p1350_p0)
}
 0x374   : > { %s1431_s4 = smov 64   ;;  %s1432_s27 = smov 4  }
 0x375   : > { %1103 = dma.vmem_to_hbm [thread:$0]  (%p1550_p7), %s791_s19, 128, %s793_s17, %s778_s24, %s1431_s4, %s1431_s4, %s1432_s27  }
 0x376 PF: > { %s807_s7 = sand.u32 1, %s1400_s21   ;;  %p1120_p3 = pnand %p924_p11, %p1513_p6 }
 0x377   : > { %s808_s9 = scalar_lea.sflag [#allocation8], %s807_s7 }
 0x378   : > { %p1121_p5 = pneg %p1120_p3 }
 0x37a   : > { %1395 = dma.done.wait (%p1121_p5), %s808_s9, 128  }
 0x37b   : > { %1397 = vsyncadd (%p1121_p5), %s808_s9, 4294967168  ;;  %s26_s26 = sadd.s32 1, %s1420_s26   ;;  %s1712_s13 = sld [smem:[#allocation20_spill]] }
 0x37c   : > { %p23_p9 = scmp.ge.s32.totalorder %s26_s26, 4   ;;  %s1713_s23 = sld [smem:[#allocation24_spill]] }
 0x37d   : > { %s1714_s24 = sld [smem:[#allocation21_spill]]  ;;  %s1716_s21 = smov %s1404_s22 }
 0x37e   : > { %s1715_s25 = sld [smem:[#allocation23_spill]]  ;;  %25 = sbr.rel (!%p23_p9) target bundleno = 12 (0xc), region = 118 }
 0x381   : > { %s1717_s22 = smov %s1712_s13 }
 0x383   :  { %814 = vsyncpa [#allocation7], 1 }
 0x384   :  { %816 = vsyncpa [#allocation7 + $0x1], 1 }
 0x385   :  { %817 = vsyncpa [#allocation10], 1 }
 0x386   :  { %819 = vsyncpa [#allocation10 + $0x1], 1 }
 0x387   :  { %820 = vsyncpa [#allocation13], 1 }
 0x388   :  { %821 = vsyncpa [#allocation8], 1 }
 0x389   :  { %823 = vsyncpa [#allocation8 + $0x1], 1 }

</bundles_post_ra>
